<compile_context>
chip_gen: v6e
topology: v6e:2x2x1
jax: 0.10.0
libtpu: 0.0.40
codegen_flags: <defaults>
</compile_context>

<pallas_src>
import functools
import math

import jax
import jax.numpy as jnp
from jax import lax
from jax.experimental import pallas as pl
from jax.experimental.pallas import tpu as pltpu


# K and V (each double-buffered by the pipeline) must fit this budget to be
# kept resident across the whole q-tile sweep.  Sized so the total kernel VMEM
# footprint stays well under v7x's 64 MiB physical VMEM per TensorCore
# (v5e/v6e have 128 MiB, so this is conservative there).
_KV_RESIDENT_BUDGET = 24 * 1024 * 1024
_VMEM_LIMIT_CAP = 56 * 1024 * 1024


def _attn_kernel(q_ref, k_ref, v_ref, o_ref, q_scl, m_sc, l_sc, acc_sc,
                 *, kv_chunk, scale, mxu_dtype):
    # grid = (B, num_q_tiles, num_kv_blocks); kv axis is last (the reduction).
    kv = pl.program_id(2)

    @pl.when(kv == 0)
    def _():
        # Hoisted: q * 1/sqrt(d_k) computed once per q tile (O(tq*D) VPU mul),
        # reused for every kv block / chunk.
        q_scl[...] = q_ref[0] * jnp.asarray(scale, dtype=q_ref.dtype)
        m_sc[...] = jnp.full_like(m_sc, -jnp.inf)
        l_sc[...] = jnp.zeros_like(l_sc)
        acc_sc[...] = jnp.zeros_like(acc_sc)

    q = q_scl[...]
    if mxu_dtype is not None:
        q = q.astype(mxu_dtype)

    kv_blk = k_ref.shape[1]
    n_chunks = kv_blk // kv_chunk

    def step(c, carry):
        m_prev, l_prev, acc_prev = carry
        start = c * kv_chunk
        if not isinstance(start, int):
            start = pl.multiple_of(start, kv_chunk)
        k = k_ref[0, pl.ds(start, kv_chunk), :]        # (kv_chunk, D)
        v = v_ref[0, pl.ds(start, kv_chunk), :]        # (kv_chunk, D)
        if mxu_dtype is not None:
            k = k.astype(mxu_dtype)
            v = v.astype(mxu_dtype)

        # scores (tq, kv_chunk): contract the last dims directly -> no XLU
        # transpose of k; MXU accumulates in f32.
        s = lax.dot_general(
            q, k,
            dimension_numbers=(((1,), (1,)), ((), ())),
            preferred_element_type=jnp.float32,
        )

        # Online softmax update (mathematically identical to the module's
        # exp / sum(exp), but numerically safe for large scores).
        m_new = jnp.maximum(m_prev, jnp.max(s, axis=-1, keepdims=True))
        alpha = jnp.exp(m_prev - m_new)
        p = jnp.exp(s - m_new)                                   # f32
        l_new = alpha * l_prev + jnp.sum(p, axis=-1, keepdims=True)
        acc_new = alpha * acc_prev + jnp.dot(
            p.astype(v.dtype), v, preferred_element_type=jnp.float32)
        return m_new, l_new, acc_new

    carry = (m_sc[...], l_sc[...], acc_sc[...])
    if n_chunks == 1:
        carry = step(0, carry)
    else:
        carry = lax.fori_loop(0, n_chunks, step, carry,
                              unroll=(n_chunks <= 8))
    m_sc[...] = carry[0]
    l_sc[...] = carry[1]
    acc_sc[...] = carry[2]

    @pl.when(kv == pl.num_programs(2) - 1)
    def _():
        inv_l = pl.reciprocal(l_sc[...], approx=True)   # EUP vrcp, once per q tile
        o_ref[0] = (acc_sc[...] * inv_l).astype(o_ref.dtype)


def _pick_tile(s, target, align):
    """Largest t <= target with s % t == 0 and t % align == 0; else s (full dim)."""
    if s <= target:
        return s
    t = (target // align) * align
    while t >= align:
        if s % t == 0:
            return t
        t -= align
    return s


def scaled_dot_attention(q, k, v, *, tq=None, kv_blk=None, kv_chunk=None,
                         mxu_bf16=False):
    """q, k, v: (B, S, D) arrays (f32 or bf16). Returns (B, S, D)."""
    B, S, D = q.shape
    assert k.shape == (B, S, D) and v.shape == (B, S, D)

    itemsize = jnp.dtype(q.dtype).itemsize
    # Sublane alignment: 8 for 4-byte dtypes, 16 for bf16, 32 for int8/fp8.
    align = max(8, 32 // itemsize)

    if tq is None:
        tq = _pick_tile(S, 256, align)
    if kv_blk is None:
        kv_resident_bytes = 2 * 2 * S * D * itemsize   # K + V, double-buffered
        kv_blk = S if kv_resident_bytes <= _KV_RESIDENT_BUDGET else _pick_tile(
            S, 1024, align)
    if kv_chunk is None:
        kv_chunk = _pick_tile(kv_blk, 512, align)
    assert S % tq == 0 and S % kv_blk == 0 and kv_blk % kv_chunk == 0

    scale = 1.0 / math.sqrt(D)
    mxu_dtype = jnp.bfloat16 if (mxu_bf16 and q.dtype == jnp.float32) else None

    grid = (B, S // tq, S // kv_blk)

    # VMEM footprint estimate -> explicit limit (capped under v7x's 64 MiB).
    vmem_est = (
        2 * 2 * tq * D * itemsize          # q in + o out blocks, double-buffered
        + 2 * 2 * kv_blk * D * itemsize    # k, v blocks, double-buffered
        + tq * D * (4 + itemsize)          # f32 accumulator + scaled-q scratch
        + 2 * tq * 4                       # m, l scratch
        + 8 * tq * kv_chunk * 4            # s / p temporaries + headroom
        + 4 * tq * D * 4                   # loop-carry / matmul temporaries
    )
    vmem_limit = int(min(_VMEM_LIMIT_CAP,
                         max(16 * 1024 * 1024, 2 * vmem_est)))

    kernel = functools.partial(_attn_kernel, kv_chunk=kv_chunk, scale=scale,
                               mxu_dtype=mxu_dtype)

    cost = pl.CostEstimate(
        flops=4 * B * S * S * D,           # QK^T + PV
        transcendentals=B * S * S,         # exp
        bytes_accessed=4 * B * S * D * itemsize,
    )

    return pl.pallas_call(
        kernel,
        out_shape=jax.ShapeDtypeStruct((B, S, D), q.dtype),
        grid_spec=pltpu.PrefetchScalarGridSpec(
            num_scalar_prefetch=0,
            grid=grid,
            in_specs=[
                pl.BlockSpec((1, tq, D), lambda b, qi, ki: (b, qi, 0)),
                # K/V block index is constant across the q-tile axis: when
                # kv_blk == S the pipeline fetches them once per batch.
                pl.BlockSpec((1, kv_blk, D), lambda b, qi, ki: (b, ki, 0)),
                pl.BlockSpec((1, kv_blk, D), lambda b, qi, ki: (b, ki, 0)),
            ],
            out_specs=pl.BlockSpec((1, tq, D), lambda b, qi, ki: (b, qi, 0)),
            scratch_shapes=[
                pltpu.VMEM((tq, D), q.dtype),        # q * 1/sqrt(d_k)
                pltpu.VMEM((tq, 1), jnp.float32),    # running max  m
                pltpu.VMEM((tq, 1), jnp.float32),    # running sum  l
                pltpu.VMEM((tq, D), jnp.float32),    # accumulator  acc
            ],
        ),
        compiler_params=pltpu.CompilerParams(
            dimension_semantics=("parallel", "parallel", "arbitrary"),
            vmem_limit_bytes=vmem_limit,
        ),
        cost_estimate=cost,
    )(q, k, v)


def _reference(q, k, v):
    d_k = q.shape[2]
    scores = jnp.einsum("bqd,bkd->bqk", q.astype(jnp.float32),
                        k.astype(jnp.float32)) / jnp.sqrt(jnp.float32(d_k))
    p = jnp.exp(scores)
    p = p / jnp.sum(p, axis=-1, keepdims=True)
    return jnp.einsum("bqk,bkd->bqd", p, v.astype(jnp.float32))


def _check(B, S, D, seed, dtype=jnp.float32, atol=2e-3, rtol=2e-3, **kwargs):
    key = jax.random.PRNGKey(seed)
    kq, kk, kv = jax.random.split(key, 3)
    q = jax.random.normal(kq, (B, S, D), dtype=jnp.float32).astype(dtype)
    k = jax.random.normal(kk, (B, S, D), dtype=jnp.float32).astype(dtype)
    v = jax.random.normal(kv, (B, S, D), dtype=jnp.float32).astype(dtype)

    out = jax.block_until_ready(scaled_dot_attention(q, k, v, **kwargs))
    ref = _reference(q, k, v)
    assert out.shape == (B, S, D)
    assert jnp.allclose(out.astype(jnp.float32), ref, atol=atol, rtol=rtol), (
        f"mismatch vs reference at shape {(B, S, D)} dtype {dtype} kwargs {kwargs}")


if __name__ == "__main__":
    # Small shape implied by the module (single-head attention): B=2, S=8, D=32.
    _check(2, 8, 32, seed=0)
    # Resident-K/V path with in-kernel kv-chunk loop (n_chunks=2, unrolled).
    _check(2, 128, 64, seed=0, tq=64, kv_chunk=64)
    # Non-resident fallback: kv grid axis with 2 steps (accumulator persistence).
    _check(2, 128, 64, seed=0, tq=64, kv_blk=64)
    # bf16 inputs (16-sublane alignment path); loose tolerance for bf16 math.
    _check(2, 128, 64, seed=0, dtype=jnp.bfloat16, atol=2e-1, rtol=2e-1)
    # Optional bf16-MXU fast path for f32 inputs; loose tolerance.
    _check(2, 8, 32, seed=0, mxu_bf16=True, atol=5e-2, rtol=5e-2)

    print("KERNEL_OK")
</pallas_src>

<mosaic_0001>
module attributes {stable_mosaic.version = 11 : i64} {
  func.func @_attn_kernel(%arg0: i32, %arg1: i32, %arg2: i32, %arg3: memref<1x8x32xf32, #tpu.memory_space<vmem>>, %arg4: memref<1x8x32xf32, #tpu.memory_space<vmem>>, %arg5: memref<1x8x32xf32, #tpu.memory_space<vmem>>, %arg6: memref<1x8x32xf32, #tpu.memory_space<vmem>>, %arg7: memref<8x32xf32, #tpu.memory_space<vmem>>, %arg8: memref<8x1xf32, #tpu.memory_space<vmem>>, %arg9: memref<8x1xf32, #tpu.memory_space<vmem>>, %arg10: memref<8x32xf32, #tpu.memory_space<vmem>>) attributes {dimension_semantics = [#tpu.dimension_semantics<parallel>, #tpu.dimension_semantics<parallel>, #tpu.dimension_semantics<arbitrary>], iteration_bounds = array<i64: 2, 1, 1>, scalar_prefetch = 0 : i64, scratch_operands = 4 : i64, tpu.core_type = #tpu.core_type<tc>, window_params = [{transform_indices = @transform_0, window_bounds = array<i64: 1, 8, 32>}, {transform_indices = @transform_1, window_bounds = array<i64: 1, 8, 32>}, {transform_indices = @transform_2, window_bounds = array<i64: 1, 8, 32>}, {transform_indices = @transform_3, window_bounds = array<i64: 1, 8, 32>}]} {
    %c0_i32 = arith.constant 0 : i32
    %0 = arith.cmpi eq, %arg2, %c0_i32 : i32
    %1 = arith.extui %0 : i1 to i32
    %c0_i32_0 = arith.constant 0 : i32
    %2 = arith.cmpi ne, %1, %c0_i32_0 : i32
    scf.if %2 {
      %c0_25 = arith.constant 0 : index
      %c0_26 = arith.constant 0 : index
      %c0_27 = arith.constant 0 : index
      %34 = vector.load %arg3[%c0_25, %c0_26, %c0_27] : memref<1x8x32xf32, #tpu.memory_space<vmem>>, vector<1x8x32xf32>
      %35 = vector.shape_cast %34 : vector<1x8x32xf32> to vector<8x32xf32>
      %cst_28 = arith.constant 0.176776692 : f32
      %36 = vector.broadcast %cst_28 : f32 to vector<8x32xf32>
      %37 = arith.mulf %35, %36 : vector<8x32xf32>
      %c0_29 = arith.constant 0 : index
      %c0_30 = arith.constant 0 : index
      %38 = vector.load %arg7[%c0_29, %c0_30] : memref<8x32xf32, #tpu.memory_space<vmem>>, vector<8x32xf32>
      tpu.vector_store %arg7[%c0_29, %c0_30], %37 {strides = array<i32>} : memref<8x32xf32, #tpu.memory_space<vmem>>, vector<8x32xf32>,
      %cst_31 = arith.constant 0xFF800000 : f32
      %39 = vector.broadcast %cst_31 : f32 to vector<8x1xf32>
      %c0_32 = arith.constant 0 : index
      %c0_33 = arith.constant 0 : index
      %40 = vector.load %arg8[%c0_32, %c0_33] : memref<8x1xf32, #tpu.memory_space<vmem>>, vector<8x1xf32>
      tpu.vector_store %arg8[%c0_32, %c0_33], %39 {strides = array<i32>} : memref<8x1xf32, #tpu.memory_space<vmem>>, vector<8x1xf32>,
      %cst_34 = arith.constant 0.000000e+00 : f32
      %41 = vector.broadcast %cst_34 : f32 to vector<8x1xf32>
      %c0_35 = arith.constant 0 : index
      %c0_36 = arith.constant 0 : index
      %42 = vector.load %arg9[%c0_35, %c0_36] : memref<8x1xf32, #tpu.memory_space<vmem>>, vector<8x1xf32>
      tpu.vector_store %arg9[%c0_35, %c0_36], %41 {strides = array<i32>} : memref<8x1xf32, #tpu.memory_space<vmem>>, vector<8x1xf32>,
      %cst_37 = arith.constant 0.000000e+00 : f32
      %43 = vector.broadcast %cst_37 : f32 to vector<8x32xf32>
      %c0_38 = arith.constant 0 : index
      %c0_39 = arith.constant 0 : index
      %44 = vector.load %arg10[%c0_38, %c0_39] : memref<8x32xf32, #tpu.memory_space<vmem>>, vector<8x32xf32>
      tpu.vector_store %arg10[%c0_38, %c0_39], %43 {strides = array<i32>} : memref<8x32xf32, #tpu.memory_space<vmem>>, vector<8x32xf32>,
    } else {
    }
    %c0 = arith.constant 0 : index
    %c0_1 = arith.constant 0 : index
    %3 = vector.load %arg7[%c0, %c0_1] : memref<8x32xf32, #tpu.memory_space<vmem>>, vector<8x32xf32>
    %c0_2 = arith.constant 0 : index
    %c0_3 = arith.constant 0 : index
    %4 = vector.load %arg8[%c0_2, %c0_3] : memref<8x1xf32, #tpu.memory_space<vmem>>, vector<8x1xf32>
    %c0_4 = arith.constant 0 : index
    %c0_5 = arith.constant 0 : index
    %5 = vector.load %arg9[%c0_4, %c0_5] : memref<8x1xf32, #tpu.memory_space<vmem>>, vector<8x1xf32>
    %c0_6 = arith.constant 0 : index
    %c0_7 = arith.constant 0 : index
    %6 = vector.load %arg10[%c0_6, %c0_7] : memref<8x32xf32, #tpu.memory_space<vmem>>, vector<8x32xf32>
    %c0_8 = arith.constant 0 : index
    %c0_9 = arith.constant 0 : index
    %c0_10 = arith.constant 0 : index
    %7 = vector.load %arg4[%c0_8, %c0_9, %c0_10] : memref<1x8x32xf32, #tpu.memory_space<vmem>>, vector<1x8x32xf32>
    %8 = vector.shape_cast %7 : vector<1x8x32xf32> to vector<8x32xf32>
    %c0_11 = arith.constant 0 : index
    %c0_12 = arith.constant 0 : index
    %c0_13 = arith.constant 0 : index
    %9 = vector.load %arg5[%c0_11, %c0_12, %c0_13] : memref<1x8x32xf32, #tpu.memory_space<vmem>>, vector<1x8x32xf32>
    %10 = vector.shape_cast %9 : vector<1x8x32xf32> to vector<8x32xf32>
    %cst = arith.constant dense<0.000000e+00> : vector<8x8xf32>
    %11 = tpu.matmul %3, %8, %cst {dimension_numbers = #tpu.dot_dimension_numbers<[1], [1], [0], [0], [0, 0, 1, 0], [], []>} : vector<8x32xf32>, vector<8x32xf32>, vector<8x8xf32> -> vector<8x8xf32>
    %cst_14 = arith.constant dense<0xFF800000> : vector<8xf32>
    %12 = vector.multi_reduction <maximumf>, %11, %cst_14 [1] : vector<8x8xf32> to vector<8xf32>
    %13 = vector.shape_cast %12 : vector<8xf32> to vector<8x1xf32>
    %14 = arith.maximumf %4, %13 : vector<8x1xf32>
    %15 = arith.subf %4, %14 : vector<8x1xf32>
    %16 = math.exp %15 : vector<8x1xf32>
    %17 = vector.broadcast %14 : vector<8x1xf32> to vector<8x8xf32>
    %18 = arith.subf %11, %17 : vector<8x8xf32>
    %19 = math.exp %18 : vector<8x8xf32>
    %20 = arith.mulf %16, %5 : vector<8x1xf32>
    %cst_15 = arith.constant dense<0.000000e+00> : vector<8xf32>
    %21 = vector.multi_reduction <add>, %19, %cst_15 [1] : vector<8x8xf32> to vector<8xf32>
    %22 = vector.shape_cast %21 : vector<8xf32> to vector<8x1xf32>
    %23 = arith.addf %20, %22 : vector<8x1xf32>
    %24 = vector.broadcast %16 : vector<8x1xf32> to vector<8x32xf32>
    %25 = arith.mulf %24, %6 : vector<8x32xf32>
    %cst_16 = arith.constant dense<0.000000e+00> : vector<8x32xf32>
    %26 = tpu.matmul %19, %10, %cst_16 {dimension_numbers = #tpu.dot_dimension_numbers<[1], [0], [0], [1], [0, 0, 1, 1], [], []>} : vector<8x8xf32>, vector<8x32xf32>, vector<8x32xf32> -> vector<8x32xf32>
    %27 = arith.addf %25, %26 : vector<8x32xf32>
    %c0_17 = arith.constant 0 : index
    %c0_18 = arith.constant 0 : index
    %28 = vector.load %arg8[%c0_17, %c0_18] : memref<8x1xf32, #tpu.memory_space<vmem>>, vector<8x1xf32>
    tpu.vector_store %arg8[%c0_17, %c0_18], %14 {strides = array<i32>} : memref<8x1xf32, #tpu.memory_space<vmem>>, vector<8x1xf32>,
    %c0_19 = arith.constant 0 : index
    %c0_20 = arith.constant 0 : index
    %29 = vector.load %arg9[%c0_19, %c0_20] : memref<8x1xf32, #tpu.memory_space<vmem>>, vector<8x1xf32>
    tpu.vector_store %arg9[%c0_19, %c0_20], %23 {strides = array<i32>} : memref<8x1xf32, #tpu.memory_space<vmem>>, vector<8x1xf32>,
    %c0_21 = arith.constant 0 : index
    %c0_22 = arith.constant 0 : index
    %30 = vector.load %arg10[%c0_21, %c0_22] : memref<8x32xf32, #tpu.memory_space<vmem>>, vector<8x32xf32>
    tpu.vector_store %arg10[%c0_21, %c0_22], %27 {strides = array<i32>} : memref<8x32xf32, #tpu.memory_space<vmem>>, vector<8x32xf32>,
    %c0_i32_23 = arith.constant 0 : i32
    %31 = arith.cmpi eq, %arg2, %c0_i32_23 : i32
    %32 = arith.extui %31 : i1 to i32
    %c0_i32_24 = arith.constant 0 : i32
    %33 = arith.cmpi ne, %32, %c0_i32_24 : i32
    scf.if %33 {
      %c0_25 = arith.constant 0 : index
      %c0_26 = arith.constant 0 : index
      %34 = vector.load %arg9[%c0_25, %c0_26] : memref<8x1xf32, #tpu.memory_space<vmem>>, vector<8x1xf32>
      %35 = tpu.reciprocal %34 {approx = true} : vector<8x1xf32> -> vector<8x1xf32>
      %c0_27 = arith.constant 0 : index
      %c0_28 = arith.constant 0 : index
      %36 = vector.load %arg10[%c0_27, %c0_28] : memref<8x32xf32, #tpu.memory_space<vmem>>, vector<8x32xf32>
      %37 = vector.broadcast %35 : vector<8x1xf32> to vector<8x32xf32>
      %38 = arith.mulf %36, %37 : vector<8x32xf32>
      %c0_29 = arith.constant 0 : index
      %c0_30 = arith.constant 0 : index
      %c0_31 = arith.constant 0 : index
      %39 = vector.load %arg6[%c0_29, %c0_30, %c0_31] : memref<1x8x32xf32, #tpu.memory_space<vmem>>, vector<1x8x32xf32>
      %40 = vector.shape_cast %39 : vector<1x8x32xf32> to vector<8x32xf32>
      %41 = vector.shape_cast %38 : vector<8x32xf32> to vector<1x8x32xf32>
      tpu.vector_store %arg6[%c0_29, %c0_30, %c0_31], %41 {strides = array<i32>} : memref<1x8x32xf32, #tpu.memory_space<vmem>>, vector<1x8x32xf32>,
    } else {
    }
    return
  }
  func.func @transform_0(%arg0: i32, %arg1: i32, %arg2: i32) -> (i32, i32, i32) {
    %c0_i32 = arith.constant 0 : i32
    %c0_i32_0 = arith.constant 0 : i32
    return %arg0, %arg1, %c0_i32 : i32, i32, i32
  }
  func.func @transform_1(%arg0: i32, %arg1: i32, %arg2: i32) -> (i32, i32, i32) {
    %c0_i32 = arith.constant 0 : i32
    %c0_i32_0 = arith.constant 0 : i32
    return %arg0, %arg2, %c0_i32 : i32, i32, i32
  }
  func.func @transform_2(%arg0: i32, %arg1: i32, %arg2: i32) -> (i32, i32, i32) {
    %c0_i32 = arith.constant 0 : i32
    %c0_i32_0 = arith.constant 0 : i32
    return %arg0, %arg2, %c0_i32 : i32, i32, i32
  }
  func.func @transform_3(%arg0: i32, %arg1: i32, %arg2: i32) -> (i32, i32, i32) {
    %c0_i32 = arith.constant 0 : i32
    %c0_i32_0 = arith.constant 0 : i32
    return %arg0, %arg1, %c0_i32 : i32, i32, i32
  }
}

</mosaic_0001>

<bundles_post_ra>
// kernel: tpu_custom_call.1
= control target key start
LH: loop header
LB: loop body
LE: loop exit
PB: predicated region body
PF: predicated region fallthrough
CT: control target
= control target key end

     0   :  { %s1172_s0 = inlined_call_operand.hbm [shape: f32[2,8,32], index: 0, kind: input, shape index: {}]   ;;  %s1173_s1 = inlined_call_operand.hbm [shape: f32[2,8,32], index: 1, kind: input, shape index: {}]   ;;  %s1174_s2 = inlined_call_operand.hbm [shape: f32[2,8,32], index: 2, kind: input, shape index: {}]   ;;  %s1175_s3 = inlined_call_operand.hbm [shape: f32[2,8,32], index: 3, kind: output, shape index: {}]  }
   0x1   :  { %1179 = sst [smem:[#allocation18_spill]] %s1173_s1 }
   0x2   :  { %8 = vsyncpa [#allocation7], 0 }
   0x3   :  { %10 = vsyncpa [#allocation7 + $0x1], 0 }
   0x4   :  { %11 = vsyncpa [#allocation10], 0 }
   0x5   :  { %13 = vsyncpa [#allocation10 + $0x1], 0 }
   0x6   :  { %14 = vsyncpa [#allocation8], 0 }
   0x7   :  { %16 = vsyncpa [#allocation8 + $0x1], 0  ;;  %s961_s12 = smov 0   ;;  %s963_s13 = smov 0  }
   0x8   :  { %s965_s14 = smov 0   ;;  %s967_s15 = smov 0  }
   0x9   :  { %s969_s16 = smov 0   ;;  %s971_s17 = smov 0  }
   0xa LB: > { %1180 = sst [smem:[#allocation16_spill]] %s927_s16  ;;  %s992_s18 = sadd.s32 4294967295, %s931_s17   ;;  %s931_s17 = sphi %s971_s17, %s22_s17   ;;  %s927_s16 = sphi %s969_s16, %s1192_s16   ;;  %s923_s15 = sphi %s967_s15, %s1191_s15   ;;  %s919_s14 = sphi %s965_s14, %s1195_s14   ;;  %s915_s13 = sphi %s963_s13, %s1194_s13   ;;  %s911_s12 = sphi %s961_s12, %s1193_s12  }
   0xb   : > { %s644_s19 = sadd.s32 4294967294, %s931_s17   ;;  %s41_s20 = sadd.s32 1, %s927_s16 }
   0xc   : > { %s50_s21 = sadd.s32 1, %s919_s14  ;;  %p43_p0 = scmp.ge.s32.totalorder %s41_s20, 2 }
   0xd   : > { %p57_p1 = scmp.ne.s32.totalorder %s919_s14, %s915_s13  ;;  %p58_p2 = scmp.eq.s32.totalorder %s931_s17, 0 }
   0xe   : > { %p63_p3 = scmp.ne.s32.totalorder %s915_s13, %s911_s12  ;;  %s1197_s20 = smov (%p43_p0, %s41_s20), 0 }
   0xf   : > { %1181 = sst [smem:[#allocation17_spill]] %s1197_s20  ;;  %p1004_p4 = por %p58_p2, %p57_p1 }
  0x10   : > { %p64_p5 = scmp.eq.s32.totalorder %s992_s18, 0  ;;  %s45_s23 = ssub.s32 %s927_s16, %s1197_s20 }
  0x11   : > { %p145_p6 = scmp.eq.s32.totalorder %s992_s18, 1  ;;  %p48_p7 = scmp.eq.s32.totalorder %s45_s23, 0 }
  0x12   : > { %p1012_p8 = por %p64_p5, %p63_p3  ;;  %p151_p10 = scmp.eq.s32.totalorder %s644_s19, 1 }
  0x13   : > { %p1016_p9 = por %p145_p6, %p57_p1  ;;  %p701_p13 = scmp.lt.s32.totalorder %s931_s17, 2 }
  0x14   : > { %s1021_s26 = scalar_select %p48_p7, %s919_s14, %s50_s21  }
  0x15   : > { %p1023_p11 = por %p151_p10, %p63_p3  ;;  %s1176_s28 = sand.u32 1, %s919_s14  }
  0x16   : > { %s1032_s29 = sshll.u32 %s1176_s28, 3  ;;  %s1035_s30 = sshll.u32 %s927_s16, 7 }
  0x17   : > { %p1039_p0 = pnand %p701_p13, %p1004_p4  ;;  %s190_s5 = sand.u32 1, %s931_s17  }
  0x18   : > { %s1187_s1 = sld [smem:[#allocation18_spill]]  ;;  %s194_s9 = scalar_lea.vmem [#allocation9], %s1032_s29 }
  0x19   : > { %s202_s10 = sshll.u32 %s194_s9, 4  ;;  %p653_p1 = scmp.ge.s32.totalorder %s931_s17, 1  ;;  %s203_s10 = int_to_ptr.vmem [resolvable:$true] %s202_s10 }
  0x1a   : > { %p226_p2 = scmp.lt.s32.totalorder %s931_s17, 3  ;;  %s1051_s11 = scalar_lea.sflag [#allocation10], %s190_s5 }
  0x1b   : > { %p765_p3 = pneg %p1039_p0  ;;  %s776_s19 = scalar_lea.vmem %s203_s10, 128 }
  0x1c   : > { %p777_p4 = scmp.ne.s32.totalorder %s203_s10, %s776_s19  ;;  %s933_s21 = smov [#allocation9]  }
  0x1d   : > { %s781_s22 = sshll.u32 %s933_s21, 4  ;;  %s782_s22 = int_to_ptr.vmem [resolvable:$false] %s781_s22 }
  0x1e   : > { %s200_s8 = scalar_lea.hbm %s1187_s1, %s1035_s30  ;;  %p779_p5 = pnand %p777_p4, %p765_p3 }
  0x1f   : > { %s783_s23 = scalar_lea.vmem %s782_s22, 256  ;;  %p784_p7 = scmp.lt.s32.totalorder %s203_s10, %s782_s22 }
  0x20   : > { %p780_p6 = pneg %p779_p5  ;;  %p785_p10 = scmp.lt.s32.totalorder %s783_s23, %s776_s19 }
  0x22   : > { %p786_p13 = por %p785_p10, %p784_p7 }
  0x24   : > { %p787_p12 = pnand %p786_p13, %p780_p6 }
  0x26   : > { %790 = shalt.err (!%p787_p12)
}
  0x27   : > { %693 = dma.hbm_to_vmem [thread:$0]  (!%p1039_p0), %s200_s8, 128, %s203_s10, %s1051_s11  }
  0x28   : > { %p1065_p4 = pnand %p653_p1, %p226_p2  ;;  %s181_s9 = scalar_lea.hbm %s1172_s0, %s1035_s30 }
  0x29   : > { %s175_s19 = scalar_lea.vmem [#allocation6], %s1032_s29  ;;  %s219_s28 = scalar_lea.hbm %s1174_s2, %s1035_s30 }
  0x2a   : > { %s183_s21 = sshll.u32 %s175_s19, 4  ;;  %s1189_s1 = sand.u32 1, %s919_s14   ;;  %s184_s21 = int_to_ptr.vmem [resolvable:$true] %s183_s21 }
  0x2b   : > { %s172_s20 = scalar_lea.sflag [#allocation7], %s1189_s1  ;;  %s804_s8 = scalar_lea.vmem %s184_s21, 128 }
  0x2c   : > { %p805_p12 = scmp.ne.s32.totalorder %s184_s21, %s804_s8  ;;  %s934_s10 = smov [#allocation6]  }
  0x2d   : > { %s809_s16 = sshll.u32 %s934_s10, 4  ;;  %s810_s16 = int_to_ptr.vmem [resolvable:$false] %s809_s16 }
  0x2e   : > { %p807_p1 = pnand %p805_p12, %p765_p3  ;;  %s811_s6 = scalar_lea.vmem %s810_s16, 256 }
  0x2f   : > { %p812_p5 = scmp.lt.s32.totalorder %s184_s21, %s810_s16  ;;  %p813_p6 = scmp.lt.s32.totalorder %s811_s6, %s804_s8 }
  0x30   : > { %p808_p2 = pneg %p807_p1 }
  0x31   : > { %p814_p7 = por %p813_p6, %p812_p5 }
  0x33   : > { %p815_p10 = pnand %p814_p7, %p808_p2 }
  0x35   : > { %818 = shalt.err (!%p815_p10)
}
  0x36   : > { %690 = dma.hbm_to_vmem [thread:$0]  (!%p1039_p0), %s181_s9, 128, %s184_s21, %s172_s20  }
  0x37   : > { %s213_s1 = scalar_lea.vmem [#allocation11], %s1032_s29  ;;  %s935_s22 = smov [#allocation11]  }
  0x38   : > { %s221_s7 = sshll.u32 %s213_s1, 4  ;;  %s837_s16 = sshll.u32 %s935_s22, 4  ;;  %s222_s7 = int_to_ptr.vmem [resolvable:$true] %s221_s7  ;;  %s838_s16 = int_to_ptr.vmem [resolvable:$false] %s837_s16 }
  0x39   : > { %s832_s19 = scalar_lea.vmem %s222_s7, 128  ;;  %s839_s23 = scalar_lea.vmem %s838_s16, 256 }
  0x3a   : > { %p833_p13 = scmp.ne.s32.totalorder %s222_s7, %s832_s19  ;;  %p840_p2 = scmp.lt.s32.totalorder %s222_s7, %s838_s16 }
  0x3b   : > { %p841_p5 = scmp.lt.s32.totalorder %s839_s23, %s832_s19 }
  0x3c   : > { %p835_p12 = pnand %p833_p13, %p765_p3 }
  0x3d   : > { %p842_p6 = por %p841_p5, %p840_p2 }
  0x3e   : > { %p836_p1 = pneg %p835_p12 }
  0x40   : > { %p843_p7 = pnand %p842_p6, %p836_p1 }
  0x42   : > { %846 = shalt.err (!%p843_p7)
}
  0x43   : > { %696 = dma.hbm_to_vmem [thread:$0]  (!%p1039_p0), %s219_s28, 128, %s222_s7, %s1051_s11  }
  0x44   : > { %230 = sbr.rel (%p1065_p4) target bundleno = 866 (0x362), region = 32  ;;  %s1100_s9 = sand.u32 (!%p1065_p4), 1, %s915_s13  }
  0x45   : > { %s1103_s21 = sshll.u32 (!%p1065_p4), %s1100_s9, 3  ;;  %s233_s4 = scalar_lea.sflag (!%p1065_p4), [#allocation7], %s1100_s9 }
  0x46   : > { %s236_s8 = scalar_lea.vmem (!%p1065_p4), [#allocation6], %s1103_s21 }
  0x49   : > { %898 = dma.done.wait (%p1012_p8), %s233_s4, 128  }
  0x4a   : > { %900 = vsyncadd (%p1012_p8), %s233_s4, 4294967168  ;;  %s241_s28 = sand.u32 1, %s992_s18   ;;  %s245_s11 = scalar_lea.vmem [#allocation9], %s1103_s21 }
  0x4b   : > { %s242_s30 = scalar_lea.sflag [#allocation10], %s241_s28 }
  0x4c   : > { %902 = dma.done.wait (%p1012_p8), %s242_s30, 256  }
  0x4d   : > { %904 = vsyncadd (%p1012_p8), %s242_s30, 4294967040  ;;  %vm293_vm0 = vcmask 261120   ;;  %v936_v0 = vmov 0.0   ;;  %vm937_vm1 = vmmov 0   ;;  %v291_v1 = vld [vmem:[%s236_s8] sm:$0xff]  ;;  %v303_v2 = vld [vmem:[%s245_s11] sm:$0xff] }
  0x4e   : > { %669 = vmatprep.subr.mxu0 %v936_v0  ;;  %298 = vst.msk [vmem:[#allocation5] sm:$0xff] %vm293_vm0, %v936_v0  ;;  %671 = vmatprep.mubr.msk.f32.mxu0 %vm937_vm1, %v936_v0  ;;  %v292_v3 = vmul.f32 0.17677669, %v291_v1  ;;  %vm295_vm2 = vcmask 7168   ;;  %v938_v5 = vmov -inf   ;;  %vm382_vm3 = vcmask 64512  }
  0x4f   : > { %674 = vmatprep.subr.mxu1 %v936_v0  ;;  %676 = vmatprep.mubr.msk.f32.mxu1 %vm937_vm1, %v936_v0  ;;  %296 = vst.msk [vmem:[#allocation3] sm:$0xff] %vm295_vm2, %v938_v5  ;;  %297 = vst.msk [vmem:[#allocation4] sm:$0xff] %vm295_vm2, %v936_v0  ;;  %v939_v9 = vmov 0   ;;  %s254_s18 = scalar_lea.vmem [#allocation11], %s1103_s21  ;;  %s662_s24 = sshll.u32 %s923_s15, 7 }
  0x50   : > { %670 = vmatpush3.xpose.msk.msra.mxu0 %vm293_vm0, %v303_v2  ;;  %294 = vst.msk [vmem:[#allocation2] sm:$0xff] %vm293_vm0, %v292_v3  ;;  %755 = vset.pattern.permute.xlu0 %v939_v9  ;;  %v304_v14 = vld [vmem:[%s254_s18] sm:$0xff]  ;;  %s286_s5 = scalar_lea.vmem [#allocation12], %s1103_s21  ;;  %s513_s7 = scalar_lea.hbm %s1175_s3, %s662_s24 }
  0x51   : > { %756 = vset.pattern.permute.xlu1 %v939_v9  ;;  %675 = vmatpush3.msra.mxu1 %v304_v14  ;;  %s515_s10 = sshll.u32 %s286_s5, 4  ;;  %s501_s19 = scalar_lea.sflag [#allocation8], %s1100_s9  ;;  %s516_s10 = int_to_ptr.vmem [resolvable:$true] %s515_s10 }
  0x52   : > { %s847_s22 = scalar_lea.vmem %s516_s10, 128  ;;  %s940_s16 = smov [#allocation12]  }
  0x53   : > { %p848_p8 = scmp.ne.s32.totalorder %s516_s10, %s847_s22  ;;  %s851_s15 = sshll.u32 %s940_s16, 4  ;;  %s852_s15 = int_to_ptr.vmem [resolvable:$false] %s851_s15 }
  0x54   : > { %s853_s23 = scalar_lea.vmem %s852_s15, 256  ;;  %p854_p4 = scmp.lt.s32.totalorder %s516_s10, %s852_s15 }
  0x55   : > { %v302_v28 = vld [vmem:[#allocation5] sm:$0xff]  ;;  %p849_p0 = pnand %p848_p8, %p1016_p9  ;;  %p855_p10 = scmp.lt.s32.totalorder %s853_s23, %s847_s22 }
  0x56   : > { %v300_v10 = vld [vmem:[#allocation3] sm:$0xff]  ;;  %v301_v22 = vld [vmem:[#allocation4] sm:$0xff] }
  0x57   : > { %v299_v4 = vld [vmem:[#allocation2] sm:$0xff]  ;;  %p850_p3 = pneg %p849_p0  ;;  %p856_p13 = por %p855_p10, %p854_p4 }
  0x58   : > { %672 = vmatmul.mubr.msk.f32.vlgmr.msra.gmra.mxu0 %vm293_vm0, %v299_v4 }
  0x59   : > { %p857_p12 = pnand %p856_p13, %p850_p3 }
 0x118   : > { %v378_v6 = vpop.f32.mrf.mxu0 }
 0x119   : > { %v383_v7 = vsel %vm382_vm3, %v378_v6, -inf }
 0x11a   : > { %384 = vmax.xlane.f32.xlu0 %v383_v7  ;;  %v673_v8 = vpop.f32.mrf.mxu0 }
 0x1a3   : > { %v385_v11 = vpop.xlane.xlu0 %384 }
 0x1a4   : > { %v386_v12 = vmax.f32 %v300_v10, %v385_v11 }
 0x1a6   : > { %v387_v13 = vsub.f32 %v300_v10, %v386_v12  ;;  %484 = vst.msk [vmem:[#allocation3] sm:$0xff] %vm295_vm2, %v386_v12  ;;  %392 = vperm.xlu0 %755, %v386_v12  }
 0x1a8   : > { %v388_v19 = vmul.f32 1.442695, %v387_v13 }
 0x221   : > { %v393_v15 = vpop.permute.xlu0 %392 }
 0x222   : > { %v395_v16 = vsub.f32 %v378_v6, %v393_v15 }
 0x224   : > { %v396_v17 = vmul.f32 1.442695, %v395_v16 }
 0x226   : > { %757 = vpow2.f32 %v396_v17 }
 0x227   : > { %759 = vpow2.f32 %v388_v19 }
 0x233   : > { %v758_v18 = vpop.eup %757 }
 0x234   : > { %677 = vmatmul.mubr.msk.f32.vlgmr.msra.gmra.mxu1 %vm382_vm3, %v758_v18  ;;  %v399_v20 = vsel %vm382_vm3, %v758_v18, 0.0  ;;  %v760_v21 = vpop.eup %759 }
 0x235   : > { %400 = vadd.xlane.f32.xlu1 %v399_v20  ;;  %v398_v23 = vmul.f32 %v760_v21, %v301_v22 }
 0x246   : > { %405 = vperm.xlu1 %756, %v760_v21  }
 0x2be   : > { %v401_v24 = vpop.xlane.xlu1 %400 }
 0x2bf   : > { %v402_v25 = vadd.f32 %v401_v24, %v398_v23 }
 0x2c1   : > { %485 = vst.msk [vmem:[#allocation4] sm:$0xff] %vm295_vm2, %v402_v25 }
 0x2c2   : > { %v406_v29 = vpop.permute.xlu1 %405 }
 0x2c3   : > { %v408_v30 = vmul.f32 %v406_v29, %v302_v28 }
 0x2c8   : > { %v490_v26 = vld [vmem:[#allocation4] sm:$0xff] }
 0x2c9   : > { %761 = vrcp.f32 %v490_v26 }
 0x2d6   : > { %v762_v27 = vpop.eup %761 }
 0x2d7   : > { %495 = vperm.xlu1 %756, %v762_v27  }
 0x2f4   : > { %v478_v31 = vpop.f32.mrf.mxu1 }
 0x2f5   : > { %v482_v32 = vadd.f32 %v478_v31, %v408_v30 }
 0x2f6   : > { %v678_v33 = vpop.f32.mrf.mxu1 }
 0x2f7   : > { %486 = vst.msk [vmem:[#allocation5] sm:$0xff] %vm293_vm0, %v482_v32 }
 0x2fe   : > { %v492_v34 = vld [vmem:[#allocation5] sm:$0xff] }
 0x352   : > { %v496_v35 = vpop.permute.xlu1 %495 }
 0x353   : > { %v498_v36 = vmul.f32 %v496_v35, %v492_v34 }
 0x355   : > { %499 = vst.msk [vmem:[%s286_s5] sm:$0xff] %vm293_vm0, %v498_v36 }
 0x356   : > { %860 = shalt.err (!%p857_p12)
}
 0x357   : > { %s861_s20 = scalar_lea.hbm %s513_s7, 128  ;;  %s865_s21 = scalar_lea.hbm %s1175_s3, 256 }
 0x358   : > { %p862_p1 = scmp.ne.s32.totalorder %s513_s7, %s861_s20  ;;  %p866_p6 = scmp.lt.s32.totalorder %s513_s7, %s1175_s3 }
 0x359   : > { %p867_p7 = scmp.lt.s32.totalorder %s865_s21, %s861_s20 }
 0x35a   : > { %p863_p2 = pnand %p862_p1, %p1016_p9 }
 0x35b   : > { %p868_p8 = por %p867_p7, %p866_p6 }
 0x35c   : > { %p864_p5 = pneg %p863_p2 }
 0x35e   : > { %p869_p0 = pnand %p868_p8, %p864_p5 }
 0x360   : > { %872 = shalt.err (!%p869_p0)
}
 0x361   : > { %685 = dma.vmem_to_hbm [thread:$0]  (%p1016_p9), %s516_s10, 128, %s513_s7, %s501_s19  }
 0x362 PF: > { %s527_s28 = sand.u32 1, %s911_s12   ;;  %p1190_p3 = scmp.ge.s32.totalorder %s931_s17, 2 }
 0x363   : > { %s528_s30 = scalar_lea.sflag [#allocation8], %s527_s28 }
 0x364   : > { %p698_p4 = pnand %p1190_p3, %p1023_p11 }
 0x366   : > { %p699_p10 = pneg %p698_p4 }
 0x368   : > { %906 = dma.done.wait (%p699_p10), %s528_s30, 128  }
 0x369   : > { %908 = vsyncadd (%p699_p10), %s528_s30, 4294967168  ;;  %s22_s17 = sadd.s32 1, %s931_s17   ;;  %s1191_s15 = sld [smem:[#allocation16_spill]] }
 0x36a   : > { %p19_p13 = scmp.ge.s32.totalorder %s22_s17, 4   ;;  %s1192_s16 = sld [smem:[#allocation17_spill]] }
 0x36b   : > { %s1193_s12 = smov %s915_s13  ;;  %s1194_s13 = smov %s919_s14 }
 0x36c   : > { %s1195_s14 = smov %s1021_s26  ;;  %21 = sbr.rel (!%p19_p13) target bundleno = 10 (0xa), region = 109 }
 0x371   :  { %533 = vsyncpa [#allocation7], 1 }
 0x372   :  { %535 = vsyncpa [#allocation7 + $0x1], 1 }
 0x373   :  { %536 = vsyncpa [#allocation10], 1 }
 0x374   :  { %538 = vsyncpa [#allocation10 + $0x1], 1 }
 0x375   :  { %539 = vsyncpa [#allocation8], 1 }
 0x376   :  { %541 = vsyncpa [#allocation8 + $0x1], 1 }

</bundles_post_ra>
